<compile_context>
chip_gen: v7x
topology: tpu7x:2x2x1
jax: 0.10.0
libtpu: 0.0.40
codegen_flags: <defaults>
</compile_context>

<pallas_src>
import functools

import jax
import jax.numpy as jnp
from jax.experimental import pallas as pl
from jax.experimental.pallas import tpu as pltpu

STATE_SIZE = 5
HIDDEN = 64
ACTION_SIZE = 2


def _round_up(n: int, m: int) -> int:
    return ((n + m - 1) // m) * m


def qnetwork_kernel(x_ref, w1_ref, b1_ref, w2_ref, b2_ref, o_ref):
    # x:  (tb, STATE_SIZE)        f32, streamed (contiguous HBM block)
    # w1: (STATE_SIZE, HIDDEN)    f32, VMEM-resident (fc1 weight, transposed)
    # b1: (1, HIDDEN)             f32, VMEM-resident
    # w2: (HIDDEN, ACTION_SIZE)   f32, VMEM-resident (fc2 weight, transposed)
    # b2: (1, ACTION_SIZE)        f32, VMEM-resident
    # o:  (tb, ACTION_SIZE)       f32
    x = x_ref[...]
    h = jnp.dot(x, w1_ref[...], preferred_element_type=jnp.float32) + b1_ref[...]
    h = jnp.maximum(h, 0.0)                                   # ReLU
    y = jnp.dot(h, w2_ref[...], preferred_element_type=jnp.float32) + b2_ref[...]
    o_ref[...] = y.astype(o_ref.dtype)


def _choose_tiling(batch: int, block_batch: int):
    """Pick (tb, num_blocks, batch_pad) with minimal tail padding."""
    if batch <= block_batch:
        # Split mid/large single-tile batches in two so v7x's second
        # TensorCore gets work; tiny batches stay single-block.
        num_blocks = 2 if batch >= 2048 else 1
    else:
        num_blocks = pl.cdiv(batch, block_batch)

    if num_blocks == 1:
        tb = batch                      # block == full dim: no alignment needed
    else:
        tb = _round_up(pl.cdiv(batch, num_blocks), 8)   # f32 sublane alignment
    batch_pad = tb * num_blocks
    return tb, num_blocks, batch_pad


@functools.partial(jax.jit, static_argnames=("block_batch",))
def qnetwork_forward(state, w1, b1, w2, b2, *, block_batch=8192):
    """QNetwork forward pass.

    state: (B, STATE_SIZE) float32
    w1:    (HIDDEN, STATE_SIZE)   (PyTorch nn.Linear layout)
    b1:    (HIDDEN,)
    w2:    (ACTION_SIZE, HIDDEN)
    b2:    (ACTION_SIZE,)
    returns (B, ACTION_SIZE) float32
    """
    batch = state.shape[0]
    tb, num_blocks, batch_pad = _choose_tiling(batch, block_batch)

    # Only pad when the chosen tiling requires it (multi-block, non-multiple
    # batch).  Padded rows produce junk Q-values which are sliced off below.
    x = state if batch_pad == batch else jnp.pad(
        state, ((0, batch_pad - batch), (0, 0)))

    # Tiny one-time reorientation of the parameters (<= a few hundred bytes).
    w1t = w1.T.astype(jnp.float32)                 # (STATE_SIZE, HIDDEN)
    w2t = w2.T.astype(jnp.float32)                 # (HIDDEN, ACTION_SIZE)
    b1r = b1.reshape(1, HIDDEN).astype(jnp.float32)
    b2r = b2.reshape(1, ACTION_SIZE).astype(jnp.float32)

    flops = 2 * batch_pad * (STATE_SIZE * HIDDEN + HIDDEN * ACTION_SIZE)
    bytes_accessed = (
        batch_pad * STATE_SIZE * 4            # x stream in
        + batch_pad * ACTION_SIZE * 4         # y stream out
        + w1t.size * 4 + w2t.size * 4 + b1r.size * 4 + b2r.size * 4)

    out = pl.pallas_call(
        qnetwork_kernel,
        out_shape=jax.ShapeDtypeStruct((batch_pad, ACTION_SIZE), jnp.float32),
        grid=(num_blocks,),
        in_specs=[
            # Streamed activations: tiled along the batch axis, contiguous in HBM.
            pl.BlockSpec((tb, STATE_SIZE), lambda i: (i, 0)),
            # Weights / biases: constant index_map -> VMEM-resident across steps.
            pl.BlockSpec((STATE_SIZE, HIDDEN), lambda i: (0, 0)),
            pl.BlockSpec((1, HIDDEN), lambda i: (0, 0)),
            pl.BlockSpec((HIDDEN, ACTION_SIZE), lambda i: (0, 0)),
            pl.BlockSpec((1, ACTION_SIZE), lambda i: (0, 0)),
        ],
        out_specs=pl.BlockSpec((tb, ACTION_SIZE), lambda i: (i, 0)),
        compiler_params=pltpu.CompilerParams(
            dimension_semantics=("parallel",),     # shard batch across v7x TCs
            vmem_limit_bytes=48 * 1024 * 1024,     # headroom for tb=8192 on all gens
        ),
        cost_estimate=pl.CostEstimate(
            flops=flops, transcendentals=0, bytes_accessed=bytes_accessed),
    )(x, w1t, b1r, w2t, b2r)

    return out if batch_pad == batch else out[:batch]


def init_params(key):
    """PyTorch nn.Linear default init: uniform(-1/sqrt(fan_in), 1/sqrt(fan_in)),
    weights in (out_features, in_features) layout."""
    k1, k2, k3, k4 = jax.random.split(key, 4)
    bound1 = 1.0 / jnp.sqrt(jnp.float32(STATE_SIZE))
    bound2 = 1.0 / jnp.sqrt(jnp.float32(HIDDEN))
    w1 = jax.random.uniform(k1, (HIDDEN, STATE_SIZE), jnp.float32, -bound1, bound1)
    b1 = jax.random.uniform(k2, (HIDDEN,), jnp.float32, -bound1, bound1)
    w2 = jax.random.uniform(k3, (ACTION_SIZE, HIDDEN), jnp.float32, -bound2, bound2)
    b2 = jax.random.uniform(k4, (ACTION_SIZE,), jnp.float32, -bound2, bound2)
    return w1, b1, w2, b2


if __name__ == "__main__":
    key = jax.random.PRNGKey(0)
    pkey, xkey = jax.random.split(key)

    w1, b1, w2, b2 = init_params(pkey)

    batch = 8
    state = jax.random.normal(xkey, (batch, STATE_SIZE), jnp.float32)

    out = qnetwork_forward(state, w1, b1, w2, b2)
    out = jax.block_until_ready(out)

    # Reference: exact PyTorch forward semantics in f32.
    ref = jnp.maximum(state @ w1.T + b1, 0.0) @ w2.T + b2
    assert out.shape == (batch, ACTION_SIZE)
    assert jnp.allclose(out, ref, atol=1e-3, rtol=1e-3), (
        f"max abs err {jnp.max(jnp.abs(out - ref))}")

    print("KERNEL_OK")
</pallas_src>

<mosaic_0001>
module attributes {stable_mosaic.version = 11 : i64} {
  func.func @qnetwork_kernel(%arg0: i32, %arg1: memref<8x5xf32, #tpu.memory_space<vmem>>, %arg2: memref<5x64xf32, #tpu.memory_space<vmem>>, %arg3: memref<1x64xf32, #tpu.memory_space<vmem>>, %arg4: memref<64x2xf32, #tpu.memory_space<vmem>>, %arg5: memref<1x2xf32, #tpu.memory_space<vmem>>, %arg6: memref<8x2xf32, #tpu.memory_space<vmem>>) attributes {dimension_semantics = [#tpu.dimension_semantics<parallel>], iteration_bounds = array<i64: 1>, scalar_prefetch = 0 : i64, scratch_operands = 0 : i64, tpu.core_type = #tpu.core_type<tc>, window_params = [{transform_indices = @transform_0, window_bounds = array<i64: 8, 5>}, {pipeline_mode = #tpu.pipeline_mode<synchronous>, transform_indices = @transform_1, window_bounds = array<i64: 5, 64>}, {pipeline_mode = #tpu.pipeline_mode<synchronous>, transform_indices = @transform_2, window_bounds = array<i64: 1, 64>}, {pipeline_mode = #tpu.pipeline_mode<synchronous>, transform_indices = @transform_3, window_bounds = array<i64: 64, 2>}, {pipeline_mode = #tpu.pipeline_mode<synchronous>, transform_indices = @transform_4, window_bounds = array<i64: 1, 2>}, {transform_indices = @transform_5, window_bounds = array<i64: 8, 2>}]} {
    %c0 = arith.constant 0 : index
    %c0_0 = arith.constant 0 : index
    %0 = vector.load %arg1[%c0, %c0_0] : memref<8x5xf32, #tpu.memory_space<vmem>>, vector<8x5xf32>
    %c0_1 = arith.constant 0 : index
    %c0_2 = arith.constant 0 : index
    %1 = vector.load %arg2[%c0_1, %c0_2] : memref<5x64xf32, #tpu.memory_space<vmem>>, vector<5x64xf32>
    %cst = arith.constant dense<0.000000e+00> : vector<8x64xf32>
    %2 = tpu.matmul %0, %1, %cst {dimension_numbers = #tpu.dot_dimension_numbers<[1], [0], [0], [1], [0, 0, 1, 1], [], []>} : vector<8x5xf32>, vector<5x64xf32>, vector<8x64xf32> -> vector<8x64xf32>
    %c0_3 = arith.constant 0 : index
    %c0_4 = arith.constant 0 : index
    %3 = vector.load %arg3[%c0_3, %c0_4] : memref<1x64xf32, #tpu.memory_space<vmem>>, vector<1x64xf32>
    %4 = vector.broadcast %3 : vector<1x64xf32> to vector<8x64xf32>
    %5 = arith.addf %2, %4 : vector<8x64xf32>
    %cst_5 = arith.constant 0.000000e+00 : f32
    %6 = vector.broadcast %cst_5 : f32 to vector<8x64xf32>
    %7 = arith.maximumf %5, %6 : vector<8x64xf32>
    %c0_6 = arith.constant 0 : index
    %c0_7 = arith.constant 0 : index
    %8 = vector.load %arg4[%c0_6, %c0_7] : memref<64x2xf32, #tpu.memory_space<vmem>>, vector<64x2xf32>
    %cst_8 = arith.constant dense<0.000000e+00> : vector<8x2xf32>
    %9 = tpu.matmul %7, %8, %cst_8 {dimension_numbers = #tpu.dot_dimension_numbers<[1], [0], [0], [1], [0, 0, 1, 1], [], []>} : vector<8x64xf32>, vector<64x2xf32>, vector<8x2xf32> -> vector<8x2xf32>
    %c0_9 = arith.constant 0 : index
    %c0_10 = arith.constant 0 : index
    %10 = vector.load %arg5[%c0_9, %c0_10] : memref<1x2xf32, #tpu.memory_space<vmem>>, vector<1x2xf32>
    %11 = vector.broadcast %10 : vector<1x2xf32> to vector<8x2xf32>
    %12 = arith.addf %9, %11 : vector<8x2xf32>
    %c0_11 = arith.constant 0 : index
    %c0_12 = arith.constant 0 : index
    %13 = vector.load %arg6[%c0_11, %c0_12] : memref<8x2xf32, #tpu.memory_space<vmem>>, vector<8x2xf32>
    tpu.vector_store %arg6[%c0_11, %c0_12], %12 {strides = array<i32>} : memref<8x2xf32, #tpu.memory_space<vmem>>, vector<8x2xf32>,
    return
  }
  func.func @transform_0(%arg0: i32) -> (i32, i32) {
    %c0_i32 = arith.constant 0 : i32
    %c0_i32_0 = arith.constant 0 : i32
    return %arg0, %c0_i32 : i32, i32
  }
  func.func @transform_1(%arg0: i32) -> (i32, i32) {
    %c0_i32 = arith.constant 0 : i32
    %c0_i32_0 = arith.constant 0 : i32
    %c0_i32_1 = arith.constant 0 : i32
    return %c0_i32, %c0_i32_0 : i32, i32
  }
  func.func @transform_2(%arg0: i32) -> (i32, i32) {
    %c0_i32 = arith.constant 0 : i32
    %c0_i32_0 = arith.constant 0 : i32
    %c0_i32_1 = arith.constant 0 : i32
    return %c0_i32, %c0_i32_0 : i32, i32
  }
  func.func @transform_3(%arg0: i32) -> (i32, i32) {
    %c0_i32 = arith.constant 0 : i32
    %c0_i32_0 = arith.constant 0 : i32
    %c0_i32_1 = arith.constant 0 : i32
    return %c0_i32, %c0_i32_0 : i32, i32
  }
  func.func @transform_4(%arg0: i32) -> (i32, i32) {
    %c0_i32 = arith.constant 0 : i32
    %c0_i32_0 = arith.constant 0 : i32
    %c0_i32_1 = arith.constant 0 : i32
    return %c0_i32, %c0_i32_0 : i32, i32
  }
  func.func @transform_5(%arg0: i32) -> (i32, i32) {
    %c0_i32 = arith.constant 0 : i32
    %c0_i32_0 = arith.constant 0 : i32
    return %arg0, %c0_i32 : i32, i32
  }
}

</mosaic_0001>

<bundles_post_ra>
// kernel: qnetwork_forward.1
= control target key start
LH: loop header
LB: loop body
LE: loop exit
PB: predicated region body
PF: predicated region fallthrough
CT: control target
= control target key end

     0   :  { %vm33_vm0 = vcmask 1044480   ;;  %vm29_vm1 = vcmask 39936   ;;  %v258_v0 = vmov 0.0   ;;  %vm259_vm2 = vmmov 0   ;;  %s330_s1 = inlined_call_operand.vmem [shape: f32[5,64], index: 1, kind: input, shape index: {}]   ;;  %s331_s0 = inlined_call_operand.vmem [shape: f32[8,5], index: 0, kind: input, shape index: {}]   ;;  %s332_s3 = inlined_call_operand.vmem [shape: f32[64,2], index: 3, kind: input, shape index: {}]   ;;  %s333_s2 = inlined_call_operand.vmem [shape: f32[1,64], index: 2, kind: input, shape index: {}]   ;;  %s334_s4 = inlined_call_operand.vmem [shape: f32[1,2], index: 4, kind: input, shape index: {}]   ;;  %s335_s5 = inlined_call_operand.vmem [shape: f32[8,2], index: 5, kind: output, shape index: {}]  }
   0x1   :  { %219 = vmatprep.subr.mxu0 %v258_v0  ;;  %v21_v1 = vld [vmem:[%s330_s1] sm:$0x1f]  ;;  %221 = vmatprep.mubr.msk.f32.mxu0 %vm259_vm2, %v258_v0  ;;  %v260_v4 = vmov 0.0|0.0   ;;  %v109_v5 = vld [vmem:[%s332_s3 + $0x8] sm:$0xff]  ;;  %v110_v6 = vld [vmem:[%s332_s3 + $0x10] sm:$0xff]  ;;  %vm123_vm3 = vcmask 523264  }
   0x2   :  { %v20_v2 = vld [vmem:[%s331_s0] sm:$0xff]  ;;  %220 = vmatpush3.msk.msra.mxu0 %vm33_vm0, %v21_v1  ;;  %243 = vmatprep.subr.bf16.mxu1 %v260_v4  ;;  %v111_v7 = vld [vmem:[%s332_s3 + $0x18] sm:$0xff]  ;;  %v113_v11 = vld [vmem:[%s332_s3 + $0x28] sm:$0xff]  ;;  %vm197_vm4 = vcmask 15360  }
   0x3   :  { %v108_v3 = vld [vmem:[%s332_s3] sm:$0xff]  ;;  %222 = vmatmul.mubr.msk.f32.vlgmr.msra.gmra.mrb[0].mxu0 %vm29_vm1, %v20_v2  ;;  %240 = vmatprep.mubr.msk.f32.mxu1 %vm259_vm2, %v258_v0  ;;  %v247_v9 = vpack.c.bf16 %v111_v7, %v110_v6  ;;  %v114_v13 = vld [vmem:[%s332_s3 + $0x30] sm:$0xff]  ;;  %v115_v14 = vld [vmem:[%s332_s3 + $0x38] sm:$0xff] }
   0x4   :  { %v244_v8 = vpack.c.bf16 %v109_v5, %v108_v3  ;;  %v112_v10 = vld [vmem:[%s332_s3 + $0x20] sm:$0xff]  ;;  %v253_v15 = vpack.c.bf16 %v115_v14, %v114_v13 }
   0x5   :  { %v250_v12 = vpack.c.bf16 %v113_v11, %v112_v10  ;;  %v203_v16 = vld [vmem:[%s333_s2] ss:$0 sm:$0xff] }
   0x6   :  { %245 = vmatpush3.bf16.msra.mxu1 %v244_v8  ;;  %v206_v21 = vld [vmem:[%s334_s4] ss:$0 sm:$0xff] }
   0x7   :  { %246 = vmatprep.subr.bf16.mxu1 %v260_v4 }
   0xa   :  { %248 = vmatpush3.bf16.msra.mxu1 %v247_v9 }
   0xb   :  { %249 = vmatprep.subr.bf16.mxu1 %v260_v4 }
   0xe   :  { %251 = vmatpush3.bf16.msra.mxu1 %v250_v12 }
   0xf   :  { %252 = vmatprep.subr.bf16.mxu1 %v260_v4 }
  0x12   :  { %254 = vmatpush3.bf16.msra.mxu1 %v253_v15 }
  0xd6   :  { %v103_v17 = vpop.f32.mrb[0].mxu0 }
  0xd7   :  { %v104_v18 = vadd.f32 %v203_v16, %v103_v17  ;;  %v223_v19 = vpop.f32.mrb[1].mxu0 }
  0xd9   :  { %v107_v20 = vmax.f32 %v104_v18, 0.0 }
  0xdb   :  { %241 = vmatmul.mubr.msk.f32.vlgmr.msra.gmra.mrb[0].mxu1 %vm123_vm3, %v107_v20 }
 0x1ae   :  { %v193_v22 = vpop.f32.mrb[0].mxu1 }
 0x1af   :  { %v194_v23 = vadd.f32 %v206_v21, %v193_v22  ;;  %v242_v24 = vpop.f32.mrb[1].mxu1 }
 0x1b1   :  { %198 = vst.msk [vmem:[%s335_s5] sm:$0xff] %vm197_vm4, %v194_v23 }

</bundles_post_ra>
